<compile_context>
chip_gen: v7x
topology: tpu7x:2x2x1
jax: 0.10.0
libtpu: 0.0.40
codegen_flags: <defaults>
</compile_context>

<pallas_src>
import functools

import jax
import jax.numpy as jnp
from jax.experimental import pallas as pl
from jax.experimental.pallas import tpu as pltpu


def deterministic_kernel(x_ref, w_ref, b_ref, out_ref, yhat_ref, *, mxu_dtype):
    x = x_ref[...]                              # (TB, H)
    if x.dtype != mxu_dtype:
        x = x.astype(mxu_dtype)                 # per-tile cast only (x changes each step)

    # Linear layer on the MXU: (TB, H) @ (H, O_pad) -> (TB, O_pad), f32 accumulation.
    # w_ref was pre-transposed (and pre-cast) once in the wrapper.
    outs = jnp.dot(x, w_ref[...], preferred_element_type=jnp.float32) + b_ref[...]
    out_ref[...] = outs

    # Numerically stable softmax over the class dim (padded logits carry a -1e30
    # bias, so exp(pad - m) == 0 and they do not perturb the normalization).
    m = jnp.max(outs, axis=-1, keepdims=True)
    e = jnp.exp(outs - m)
    denom = jnp.sum(e, axis=-1, keepdims=True)
    yhat_ref[...] = e * pl.reciprocal(denom, approx=True)   # EUP vrcp, free slot


def deterministic_forward(x, fc_weight, fc_bias, *, tile_b=512,
                          mxu_dtype=jnp.float32):
    """Eval-mode Deterministic forward. Returns (outputs, x, zeros_like(x), y_hat)."""
    B, H = x.shape
    O, H_w = fc_weight.shape
    assert H_w == H, "fc_weight must be (out_dim, input_dim)"

    # ---- lane-dense output padding: pad class dim up to a multiple of 128 ----
    O_pad = max(128, ((O + 127) // 128) * 128)
    w_t = jnp.transpose(fc_weight)              # (H, O): one-time transpose in HBM
    if O_pad != O:
        w_t = jnp.pad(w_t, ((0, 0), (0, O_pad - O)))
        bias = jnp.pad(fc_bias, (0, O_pad - O), constant_values=-1e30)
    else:
        bias = fc_bias
    bias = bias.reshape(1, O_pad).astype(jnp.float32)
    if w_t.dtype != mxu_dtype:
        w_t = w_t.astype(mxu_dtype)             # pre-cast once (bf16 path)

    # ---- batch tile: multiple of 8, partial last tile allowed, grid >= 2 if possible ----
    if B < 8:
        tb = B                                  # tiny batch: single full block (legal)
    else:
        tb = max(8, (min(tile_b, B) // 8) * 8)
        if B >= 16:
            half = (((B + 1) // 2 + 7) // 8) * 8
            tb = min(tb, half)                  # ensure >= 2 grid steps (2-TC work on v7x)
    grid = (pl.cdiv(B, tb),)

    # ---- VMEM budget: raise the scoped limit only when the tiles need it ----
    w_bytes = H * O_pad * jnp.dtype(mxu_dtype).itemsize          # single-buffered
    vmem_need = (2 * tb * H * 4                                  # x tile, double-buffered
                 + w_bytes
                 + 8 * O_pad * 4                                 # bias (padded row)
                 + 2 * 2 * tb * O_pad * 4)                       # two f32 outputs, double-buffered
    vmem_limit = None
    if vmem_need > 12 * 1024 * 1024:
        # Note: on v7x (64 MiB physical VMEM) prefer lowering tile_b over raising this.
        vmem_limit = min(int(vmem_need * 3 // 2), 100 * 1024 * 1024)

    kernel = functools.partial(deterministic_kernel, mxu_dtype=mxu_dtype)

    outputs_p, y_hat_p = pl.pallas_call(
        kernel,
        out_shape=(jax.ShapeDtypeStruct((B, O_pad), jnp.float32),   # outputs (padded)
                   jax.ShapeDtypeStruct((B, O_pad), jnp.float32)),  # y_hat   (padded)
        grid=grid,
        in_specs=[
            # x tile: pipelined / double-buffered across the batch grid.
            pl.BlockSpec((tb, H), lambda i: (i, 0)),
            # weight + bias: replicated (constant index_map) -> single-buffer them.
            pl.BlockSpec((H, O_pad), lambda i: (0, 0),
                         pipeline_mode=pl.Buffered(1)),
            pl.BlockSpec((1, O_pad), lambda i: (0, 0),
                         pipeline_mode=pl.Buffered(1)),
        ],
        out_specs=(pl.BlockSpec((tb, O_pad), lambda i: (i, 0)),
                   pl.BlockSpec((tb, O_pad), lambda i: (i, 0))),
        compiler_params=pltpu.CompilerParams(
            dimension_semantics=("parallel",),      # batch tiles are independent
            vmem_limit_bytes=vmem_limit),
    )(x, w_t, bias)

    outputs = outputs_p[:, :O]
    y_hat = y_hat_p[:, :O]
    # Trivial passthrough outputs of the module (no compute worth fusing):
    return outputs, x, jnp.zeros_like(x), y_hat


if __name__ == "__main__":
    # Small shapes consistent with the module: x is (B, input_dim); 10-class head
    # exercises the lane-padding path, B=16 exercises a 2-step batch grid.
    B = 16
    INPUT_DIM = 256
    OUT_DIM = 10

    key = jax.random.PRNGKey(0)
    kx, kw, kb = jax.random.split(key, 3)

    x = jax.random.normal(kx, (B, INPUT_DIM), dtype=jnp.float32)

    # nn.Linear-style init: U(-1/sqrt(in), 1/sqrt(in)).
    bound = 1.0 / jnp.sqrt(jnp.float32(INPUT_DIM))
    fc_weight = jax.random.uniform(kw, (OUT_DIM, INPUT_DIM),
                                   minval=-bound, maxval=bound, dtype=jnp.float32)
    fc_bias = jax.random.uniform(kb, (OUT_DIM,),
                                 minval=-bound, maxval=bound, dtype=jnp.float32)

    # Plain-JAX reference for the fused linear + softmax.
    ref_out = x @ fc_weight.T + fc_bias[None, :]
    ref_yhat = jax.nn.softmax(ref_out, axis=1)

    # ---- f32 path (exact parity with the PyTorch reference) ----
    outputs, x_out, zeros, y_hat = jax.block_until_ready(
        deterministic_forward(x, fc_weight, fc_bias))
    assert outputs.shape == (B, OUT_DIM)
    assert y_hat.shape == (B, OUT_DIM)
    assert x_out.shape == (B, INPUT_DIM)
    assert zeros.shape == (B, INPUT_DIM)
    assert bool(jnp.all(zeros == 0.0))
    assert bool(jnp.allclose(outputs, ref_out, atol=2e-3, rtol=2e-3))
    assert bool(jnp.allclose(y_hat, ref_yhat, atol=2e-3, rtol=2e-3))

    # ---- ragged batch (partial last tile, no full-B fallback) ----
    Br = 13
    xr = x[:Br]
    out_r, _, _, yhat_r = jax.block_until_ready(
        deterministic_forward(xr, fc_weight, fc_bias))
    assert out_r.shape == (Br, OUT_DIM) and yhat_r.shape == (Br, OUT_DIM)
    assert bool(jnp.allclose(out_r, ref_out[:Br], atol=2e-3, rtol=2e-3))
    assert bool(jnp.allclose(yhat_r, ref_yhat[:Br], atol=2e-3, rtol=2e-3))

    # ---- opt-in bf16-MXU variant (weight pre-cast once, f32 accumulate) ----
    out_bf16, _, _, yhat_bf16 = jax.block_until_ready(
        deterministic_forward(x, fc_weight, fc_bias, mxu_dtype=jnp.bfloat16))
    assert bool(jnp.allclose(out_bf16, ref_out, atol=5e-2, rtol=5e-2))
    assert bool(jnp.allclose(yhat_bf16, ref_yhat, atol=5e-2, rtol=5e-2))

    print("KERNEL_OK")
</pallas_src>

<mosaic_0001>
module attributes {stable_mosaic.version = 11 : i64} {
  func.func @deterministic_kernel(%arg0: i32, %arg1: memref<8x256xf32, #tpu.memory_space<vmem>>, %arg2: memref<256x128xf32, #tpu.memory_space<vmem>>, %arg3: memref<1x128xf32, #tpu.memory_space<vmem>>, %arg4: memref<8x128xf32, #tpu.memory_space<vmem>>, %arg5: memref<8x128xf32, #tpu.memory_space<vmem>>) attributes {dimension_semantics = [#tpu.dimension_semantics<parallel>], iteration_bounds = array<i64: 2>, scalar_prefetch = 0 : i64, scratch_operands = 0 : i64, tpu.core_type = #tpu.core_type<tc>, window_params = [{transform_indices = @transform_0, window_bounds = array<i64: 8, 256>}, {pipeline_mode = #tpu.pipeline_mode<synchronous>, transform_indices = @transform_1, window_bounds = array<i64: 256, 128>}, {pipeline_mode = #tpu.pipeline_mode<synchronous>, transform_indices = @transform_2, window_bounds = array<i64: 1, 128>}, {transform_indices = @transform_3, window_bounds = array<i64: 8, 128>}, {transform_indices = @transform_4, window_bounds = array<i64: 8, 128>}]} {
    %c0 = arith.constant 0 : index
    %c0_0 = arith.constant 0 : index
    %0 = vector.load %arg1[%c0, %c0_0] : memref<8x256xf32, #tpu.memory_space<vmem>>, vector<8x256xf32>
    %c0_1 = arith.constant 0 : index
    %c0_2 = arith.constant 0 : index
    %1 = vector.load %arg2[%c0_1, %c0_2] : memref<256x128xf32, #tpu.memory_space<vmem>>, vector<256x128xf32>
    %cst = arith.constant dense<0.000000e+00> : vector<8x128xf32>
    %2 = tpu.matmul %0, %1, %cst {dimension_numbers = #tpu.dot_dimension_numbers<[1], [0], [0], [1], [0, 0, 1, 1], [], []>} : vector<8x256xf32>, vector<256x128xf32>, vector<8x128xf32> -> vector<8x128xf32>
    %c0_3 = arith.constant 0 : index
    %c0_4 = arith.constant 0 : index
    %3 = vector.load %arg3[%c0_3, %c0_4] : memref<1x128xf32, #tpu.memory_space<vmem>>, vector<1x128xf32>
    %4 = vector.broadcast %3 : vector<1x128xf32> to vector<8x128xf32>
    %5 = arith.addf %2, %4 : vector<8x128xf32>
    %c0_5 = arith.constant 0 : index
    %c0_6 = arith.constant 0 : index
    %6 = vector.load %arg4[%c0_5, %c0_6] : memref<8x128xf32, #tpu.memory_space<vmem>>, vector<8x128xf32>
    tpu.vector_store %arg4[%c0_5, %c0_6], %5 {strides = array<i32>} : memref<8x128xf32, #tpu.memory_space<vmem>>, vector<8x128xf32>,
    %cst_7 = arith.constant dense<0xFF800000> : vector<8xf32>
    %7 = vector.multi_reduction <maximumf>, %5, %cst_7 [1] : vector<8x128xf32> to vector<8xf32>
    %8 = vector.shape_cast %7 : vector<8xf32> to vector<8x1xf32>
    %9 = vector.broadcast %8 : vector<8x1xf32> to vector<8x128xf32>
    %10 = arith.subf %5, %9 : vector<8x128xf32>
    %11 = math.exp %10 : vector<8x128xf32>
    %cst_8 = arith.constant dense<0.000000e+00> : vector<8xf32>
    %12 = vector.multi_reduction <add>, %11, %cst_8 [1] : vector<8x128xf32> to vector<8xf32>
    %13 = vector.shape_cast %12 : vector<8xf32> to vector<8x1xf32>
    %14 = tpu.reciprocal %13 {approx = true} : vector<8x1xf32> -> vector<8x1xf32>
    %15 = vector.broadcast %14 : vector<8x1xf32> to vector<8x128xf32>
    %16 = arith.mulf %11, %15 : vector<8x128xf32>
    %c0_9 = arith.constant 0 : index
    %c0_10 = arith.constant 0 : index
    %17 = vector.load %arg5[%c0_9, %c0_10] : memref<8x128xf32, #tpu.memory_space<vmem>>, vector<8x128xf32>
    tpu.vector_store %arg5[%c0_9, %c0_10], %16 {strides = array<i32>} : memref<8x128xf32, #tpu.memory_space<vmem>>, vector<8x128xf32>,
    return
  }
  func.func @transform_0(%arg0: i32) -> (i32, i32) {
    %c0_i32 = arith.constant 0 : i32
    %c0_i32_0 = arith.constant 0 : i32
    return %arg0, %c0_i32 : i32, i32
  }
  func.func @transform_1(%arg0: i32) -> (i32, i32) {
    %c0_i32 = arith.constant 0 : i32
    %c0_i32_0 = arith.constant 0 : i32
    %c0_i32_1 = arith.constant 0 : i32
    return %c0_i32, %c0_i32_0 : i32, i32
  }
  func.func @transform_2(%arg0: i32) -> (i32, i32) {
    %c0_i32 = arith.constant 0 : i32
    %c0_i32_0 = arith.constant 0 : i32
    %c0_i32_1 = arith.constant 0 : i32
    return %c0_i32, %c0_i32_0 : i32, i32
  }
  func.func @transform_3(%arg0: i32) -> (i32, i32) {
    %c0_i32 = arith.constant 0 : i32
    %c0_i32_0 = arith.constant 0 : i32
    return %arg0, %c0_i32 : i32, i32
  }
  func.func @transform_4(%arg0: i32) -> (i32, i32) {
    %c0_i32 = arith.constant 0 : i32
    %c0_i32_0 = arith.constant 0 : i32
    return %arg0, %c0_i32 : i32, i32
  }
}

</mosaic_0001>

<bundles_post_ra>
// kernel: tpu_custom_call.1
= control target key start
LH: loop header
LB: loop body
LE: loop exit
PB: predicated region body
PF: predicated region fallthrough
CT: control target
= control target key end

     0   :  { %10 = vsyncpa [#allocation3], 0  ;;  %s1089_s0 = inlined_call_operand.hbm [shape: f32[16,256], index: 0, kind: input, shape index: {}]   ;;  %s1090_s1 = inlined_call_operand.hbm [shape: f32[256,128], index: 1, kind: input, shape index: {}]   ;;  %s1091_s2 = inlined_call_operand.vmem [shape: f32[1,128], index: 2, kind: input, shape index: {}]   ;;  %s1092_s3 = inlined_call_operand.hbm [shape: f32[16,128], index: 3, kind: output, shape index: {0}]   ;;  %s1093_s4 = inlined_call_operand.hbm [shape: f32[16,128], index: 4, kind: output, shape index: {1}]  }
   0x1   :  { %12 = vsyncpa [#allocation3 + $0x1], 0 }
   0x2   :  { %13 = vsyncpa [#allocation6], 0 }
   0x3   :  { %14 = vsyncpa [#allocation4], 0 }
   0x4   :  { %16 = vsyncpa [#allocation4 + $0x1], 0 }
   0x5   :  { %17 = vsyncpa [#allocation9], 0 }
   0x6   :  { %19 = vsyncpa [#allocation9 + $0x1], 0  ;;  %s854_s15 = smov 0   ;;  %s856_s16 = smov 0  }
   0x7   :  { %s858_s17 = smov 0   ;;  %s860_s18 = smov 0  }
   0x8 LB: > { %s875_s19 = sadd.s32 4294967295, %s821_s18   ;;  %s506_s20 = sadd.s32 4294967294, %s821_s18   ;;  %s821_s18 = sphi %s860_s18, %s1113_s18   ;;  %s817_s17 = sphi %s858_s17, %s1112_s17   ;;  %s813_s16 = sphi %s856_s16, %s1111_s16   ;;  %s809_s15 = sphi %s854_s15, %s1110_s15  }
   0x9   : > { %p45_p0 = scmp.ne.s32.totalorder %s813_s16, %s809_s15  ;;  %p1094_p1 = scmp.eq.s32.totalorder %s875_s19, 0 }
   0xa   : > { %p117_p3 = scmp.eq.s32.totalorder %s506_s20, 1  ;;  %p507_p5 = scmp.ge.s32.totalorder %s821_s18, 1 }
   0xb   : > { %p884_p4 = por %p1094_p1, %p45_p0  ;;  %p150_p7 = scmp.lt.s32.totalorder %s821_s18, 3 }
   0xc   : > { %p889_p6 = por %p117_p3, %p45_p0  ;;  %s823_s24 = smov [#allocation5]  }
   0xd   : > { %s1097_s21 = scalar_select %p884_p4, 1, 0 }
   0xe   : > { %s1098_s22 = scalar_select %p889_p6, 1, 0 }
   0xf   : > { %p894_p8 = pnand %p507_p5, %p150_p7  ;;  %s162_s25 = sshll.u32 %s823_s24, 4  ;;  %s898_s25 = int_to_ptr.vmem [resolvable:$true] %s162_s25 }
  0x10   : > { %s910_s27 = sadd.s32 1, %s821_s18   ;;  %s32_s28 = sadd.s32 1, %s817_s17 }
  0x11   : > { %s1099_s23 = scalar_select %p894_p8, 1, 0 }
  0x12   : > { %p603_p9 = pneg %p894_p8  ;;  %s29_s29 = ssub.s32 %s821_s18, %s910_s27 }
  0x13   : > { %s661_s6 = scalar_lea.hbm %s1090_s1, 4096 }
  0x14   : > { %p905_p11 = pnand %p603_p9, %p1094_p1  ;;  %p662_p12 = scmp.ne.s32.totalorder %s1090_s1, %s661_s6 }
  0x15   : > { %p668_p5 = scmp.lt.u32.totalorder %s661_s6, %s1090_s1 }
  0x16   : > { %p663_p13 = pneg %p905_p11 }
  0x18   : > { %p664_p0 = pnand %p663_p13, %p662_p12 }
  0x1a   : > { %p665_p3 = pneg %p664_p0 }
  0x1c   : > { %p670_p7 = pnand %p668_p5, %p665_p3 }
  0x1e   : > { %673 = shalt.err (!%p670_p7)
}
  0x1f   : > { %s674_s11 = scalar_lea.vmem %s898_s25, 4096  ;;  %p682_p2 = scmp.lt.s32.totalorder %s898_s25, %s898_s25 }
  0x20   : > { %p675_p9 = scmp.ne.s32.totalorder %s898_s25, %s674_s11  ;;  %p683_p6 = scmp.lt.s32.totalorder %s674_s11, %s674_s11 }
  0x22   : > { %p677_p10 = pnand %p675_p9, %p663_p13  ;;  %p684_p4 = por %p683_p6, %p682_p2 }
  0x24   : > { %p678_p1 = pneg %p677_p10 }
  0x26   : > { %p685_p8 = pnand %p684_p4, %p678_p1 }
  0x28   : > { %688 = shalt.err (!%p685_p8)
}
  0x29   : > { %s824_s12 = smov 128   ;;  %s825_s13 = smov 8  }
  0x2a   : > { %606 = dma.hbm_to_vmem [thread:$0]  (!%p905_p11), %s1090_s1, 4096, %s898_s25, [#allocation6], %s824_s12, %s824_s12, %s825_s13  }
  0x2b   : > { %p30_p2 = scmp.eq.s32.totalorder %s29_s29, 0  ;;  %p39_p1 = scmp.ne.s32.totalorder %s817_s17, %s813_s16 }
  0x2c   : > { %p40_p4 = scmp.eq.s32.totalorder %s821_s18, 0  ;;  %p619_p6 = scmp.lt.s32.totalorder %s821_s18, 2 }
  0x2d   : > { %s941_s24 = scalar_select %p30_p2, %s817_s17, %s32_s28  }
  0x2e   : > { %p41_p8 = por %p40_p4, %p39_p1  ;;  %p1101_p10 = scmp.eq.s32.totalorder %s875_s19, 1 }
  0x2f   : > { %s179_s5 = sand.u32 1, %s817_s17   ;;  %s525_s6 = sshll.u32 %s821_s18, 8 }
  0x30   : > { %p945_p12 = por %p1101_p10, %p39_p1  ;;  %s510_s7 = sshll.u32 %s179_s5, 4 }
  0x31   : > { %s954_s9 = scalar_lea.hbm %s1089_s0, %s525_s6  ;;  %s183_s25 = scalar_lea.vmem [#allocation2], %s510_s7 }
  0x32   : > { %s191_s28 = sshll.u32 %s183_s25, 4  ;;  %p956_p11 = pnand %p619_p6, %p41_p8  ;;  %s960_s28 = int_to_ptr.vmem [resolvable:$true] %s191_s28 }
  0x33   : > { %s180_s10 = scalar_lea.sflag [#allocation3], %s179_s5  ;;  %s689_s11 = scalar_lea.hbm %s954_s9, 256 }
  0x34   : > { %p690_p13 = scmp.ne.s32.totalorder %s954_s9, %s689_s11  ;;  %p691_p0 = pneg %p956_p11 }
  0x35   : > { %s694_s14 = scalar_lea.hbm %s1089_s0, 512  ;;  %p695_p7 = scmp.lt.u32.totalorder %s954_s9, %s1089_s0 }
  0x36   : > { %p692_p3 = pnand %p691_p0, %p690_p13  ;;  %p696_p9 = scmp.lt.u32.totalorder %s694_s14, %s689_s11 }
  0x37   : > { %p698_p1 = scmp.lt.u32.totalorder %s689_s11, %s954_s9 }
  0x38   : > { %p693_p5 = pneg %p692_p3  ;;  %p697_p2 = por %p696_p9, %p695_p7 }
  0x3a   : > { %p699_p4 = por %p698_p1, %p697_p2 }
  0x3c   : > { %p700_p6 = pnand %p699_p4, %p693_p5 }
  0x3e   : > { %703 = shalt.err (!%p700_p6)
}
  0x3f   : > { %s704_s5 = scalar_lea.vmem %s960_s28, 256  ;;  %s826_s7 = smov [#allocation2]  }
  0x40   : > { %p705_p8 = scmp.ne.s32.totalorder %s960_s28, %s704_s5  ;;  %s709_s26 = sshll.u32 %s826_s7, 4  ;;  %s710_s26 = int_to_ptr.vmem [resolvable:$false] %s709_s26 }
  0x41   : > { %s711_s8 = scalar_lea.vmem %s710_s26, 512  ;;  %p712_p3 = scmp.lt.s32.totalorder %s960_s28, %s710_s26 }
  0x42   : > { %p707_p10 = pnand %p705_p8, %p691_p0  ;;  %p713_p7 = scmp.lt.s32.totalorder %s711_s8, %s704_s5 }
  0x44   : > { %p708_p13 = pneg %p707_p10  ;;  %p714_p9 = por %p713_p7, %p712_p3 }
  0x46   : > { %p715_p2 = pnand %p714_p9, %p708_p13 }
  0x48   : > { %718 = shalt.err (!%p715_p2)
}
  0x49   : > { %610 = dma.hbm_to_vmem [thread:$0]  (!%p956_p11), %s954_s9, 256, %s960_s28, %s180_s10  }
  0x4a   : > { %p1104_p5 = scmp.ne.s32.totalorder %s1099_s23, 0 }
  0x4b   : > { %s990_s25 = sand.u32 (!%p1104_p5), 1, %s813_s16   ;;  %p1105_p0 = scmp.ne.s32.totalorder (!%p1104_p5), %s1097_s21, 0 }
  0x4c   : > { %200 = sbr.rel (%p1104_p5) target bundleno = 665 (0x299), region = 32  ;;  %s514_s11 = sshll.u32 (!%p1104_p5), %s990_s25, 4 }
  0x4d   : > { %s203_s12 = scalar_lea.sflag (!%p1104_p5), [#allocation3], %s990_s25  ;;  %s994_s13 = scalar_lea.vmem (!%p1104_p5), [#allocation2], %s514_s11 }
  0x53   : > { %792 = dma.done.wait (%p1105_p0), %s203_s12, 256  }
  0x54   : > { %794 = vsyncadd (%p1105_p0), %s203_s12, 4294967040  ;;  %p1106_p11 = scmp.eq.s32.totalorder %s875_s19, 0 }
  0x56   : > { %796 = dma.done.wait (%p1106_p11), [#allocation6], 4096   ;;  %p1107_p1 = pmov %p1106_p11 }
  0x57   : > { %v258_v0 = vld [vmem:[#allocation5 + $0x80] sm:$0xff]  ;;  %v259_v1 = vld [vmem:[#allocation5 + $0x88] sm:$0xff]  ;;  %v260_v5 = vld [vmem:[#allocation5 + $0x90] sm:$0xff]  ;;  %s516_s21 = sshll.u32 %s990_s25, 3  ;;  %s521_s29 = sshll.u32 %s875_s19, 7 }
  0x58   : > { %798 = vsyncadd (%p1107_p1), [#allocation6], 4294963200  ;;  %v242_v2 = vld [vmem:[#allocation5] sm:$0xff]  ;;  %v561_v3 = vpack.c.bf16 %v259_v1, %v258_v0  ;;  %v243_v4 = vld [vmem:[#allocation5 + $0x8] sm:$0xff]  ;;  %s232_s28 = scalar_lea.vmem [#allocation7], %s516_s21  ;;  %s1018_s20 = scalar_lea.hbm %s1092_s3, %s521_s29 }
  0x59   : > { %v261_v6 = vld [vmem:[#allocation5 + $0x98] sm:$0xff]  ;;  %v563_v7 = vpack.c.bf16 %v243_v4, %v242_v2  ;;  %v244_v9 = vld [vmem:[#allocation5 + $0x10] sm:$0xff]  ;;  %v262_v11 = vld [vmem:[#allocation5 + $0xa0] sm:$0xff]  ;;  %s381_s6 = sshll.u32 %s232_s28, 4  ;;  %s363_s5 = scalar_lea.sflag [#allocation4], %s990_s25  ;;  %s382_s6 = int_to_ptr.vmem [resolvable:$true] %s381_s6 }
  0x5a   : > { %v565_v8 = vpack.c.bf16 %v261_v6, %v260_v5  ;;  %v245_v10 = vld [vmem:[#allocation5 + $0x18] sm:$0xff]  ;;  %562 = vmatprep.subr.bf16.mxu0 %v561_v3  ;;  %v263_v12 = vld [vmem:[#allocation5 + $0xa8] sm:$0xff]  ;;  %v246_v15 = vld [vmem:[#allocation5 + $0x20] sm:$0xff]  ;;  %s719_s7 = scalar_lea.vmem %s382_s6, 128  ;;  %s827_s26 = smov [#allocation7]  }
  0x5b   : > { %564 = vmatpush3.bf16.msra.mxu0 %v563_v7  ;;  %v567_v13 = vpack.c.bf16 %v245_v10, %v244_v9  ;;  %v569_v14 = vpack.c.bf16 %v263_v12, %v262_v11  ;;  %v247_v16 = vld [vmem:[#allocation5 + $0x28] sm:$0xff]  ;;  %v264_v17 = vld [vmem:[#allocation5 + $0xb0] sm:$0xff]  ;;  %v265_v18 = vld [vmem:[#allocation5 + $0xb8] sm:$0xff]  ;;  %p720_p4 = scmp.ne.s32.totalorder %s382_s6, %s719_s7  ;;  %s723_s8 = sshll.u32 %s827_s26, 4  ;;  %s724_s8 = int_to_ptr.vmem [resolvable:$false] %s723_s8 }
  0x5c   : > { %566 = vmatprep.subr.bf16.mxu0 %v565_v8  ;;  %v571_v19 = vpack.c.bf16 %v247_v16, %v246_v15  ;;  %v573_v20 = vpack.c.bf16 %v265_v18, %v264_v17  ;;  %v248_v21 = vld [vmem:[#allocation5 + $0x30] sm:$0xff]  ;;  %v249_v22 = vld [vmem:[#allocation5 + $0x38] sm:$0xff]  ;;  %v266_v23 = vld [vmem:[#allocation5 + $0xc0] sm:$0xff]  ;;  %s725_s11 = scalar_lea.vmem %s724_s8, 256  ;;  %p726_p10 = scmp.lt.s32.totalorder %s382_s6, %s724_s8 }
  0x5d   : > { %v267_v24 = vld [vmem:[#allocation5 + $0xc8] sm:$0xff]  ;;  %v575_v26 = vpack.c.bf16 %v249_v22, %v248_v21  ;;  %v250_v28 = vld [vmem:[#allocation5 + $0x40] sm:$0xff]  ;;  %v268_v30 = vld [vmem:[#allocation5 + $0xd0] sm:$0xff]  ;;  %p721_p6 = pnand %p720_p4, %p945_p12  ;;  %p727_p13 = scmp.lt.s32.totalorder %s725_s11, %s719_s7 }
  0x5e   : > { %v241_v25 = vld [vmem:[%s994_s13 + $0x8] sm:$0xff]  ;;  %v577_v27 = vpack.c.bf16 %v267_v24, %v266_v23  ;;  %v252_v34 = vld [vmem:[#allocation5 + $0x50] sm:$0xff]  ;;  %v270_v36 = vld [vmem:[#allocation5 + $0xe0] sm:$0xff] }
  0x5f   : > { %568 = vmatpush3.bf16.msra.mxu0 %v567_v13  ;;  %345 = vmatprep.mubr.f32.mxu0 %v241_v25  ;;  %v251_v29 = vld [vmem:[#allocation5 + $0x48] sm:$0xff]  ;;  %v269_v31 = vld [vmem:[#allocation5 + $0xd8] sm:$0xff]  ;;  %v254_v40 = vld [vmem:[#allocation5 + $0x60] sm:$0xff]  ;;  %p722_p8 = pneg %p721_p6  ;;  %p728_p3 = por %p727_p13, %p726_p10 }
  0x60   : > { %570 = vmatprep.subr.bf16.mxu0 %v569_v14  ;;  %v579_v32 = vpack.c.bf16 %v251_v29, %v250_v28  ;;  %v581_v33 = vpack.c.bf16 %v269_v31, %v268_v30  ;;  %v253_v35 = vld [vmem:[#allocation5 + $0x58] sm:$0xff]  ;;  %v271_v37 = vld [vmem:[#allocation5 + $0xe8] sm:$0xff]  ;;  %v272_v42 = vld [vmem:[#allocation5 + $0xf0] sm:$0xff] }
  0x61   : > { %v583_v38 = vpack.c.bf16 %v253_v35, %v252_v34  ;;  %v585_v39 = vpack.c.bf16 %v271_v37, %v270_v36  ;;  %v255_v41 = vld [vmem:[#allocation5 + $0x68] sm:$0xff]  ;;  %v273_v43 = vld [vmem:[#allocation5 + $0xf8] sm:$0xff]  ;;  %v256_v46 = vld [vmem:[#allocation5 + $0x70] sm:$0xff]  ;;  %p729_p7 = pnand %p728_p3, %p722_p8 }
  0x62   : > { %v587_v44 = vpack.c.bf16 %v255_v41, %v254_v40  ;;  %v589_v45 = vpack.c.bf16 %v273_v43, %v272_v42  ;;  %v257_v47 = vld [vmem:[#allocation5 + $0x78] sm:$0xff]  ;;  %v240_v49 = vld [vmem:[%s994_s13] sm:$0xff] }
  0x63   : > { %572 = vmatpush3.bf16.msra.mxu0 %v571_v19  ;;  %v591_v48 = vpack.c.bf16 %v257_v47, %v256_v46  ;;  %v518_v51 = vld [vmem:[%s1091_s2] ss:$0 sm:$0xff] }
  0x64   : > { %574 = vmatprep.subr.bf16.mxu0 %v573_v20 }
  0x67   : > { %576 = vmatpush3.bf16.msra.mxu0 %v575_v26 }
  0x68   : > { %578 = vmatprep.subr.bf16.mxu0 %v577_v27 }
  0x6b   : > { %580 = vmatpush3.bf16.msra.mxu0 %v579_v32 }
  0x6c   : > { %582 = vmatprep.subr.bf16.mxu0 %v581_v33 }
  0x6f   : > { %584 = vmatpush3.bf16.msra.mxu0 %v583_v38 }
  0x70   : > { %586 = vmatprep.subr.bf16.mxu0 %v585_v39 }
  0x73   : > { %588 = vmatpush3.bf16.msra.mxu0 %v587_v44 }
  0x74   : > { %590 = vmatprep.subr.bf16.mxu0 %v589_v45 }
  0x77   : > { %592 = vmatpush3.bf16.msra.mxu0 %v591_v48 }
  0x7a   : > { %346 = vmatmul.mubr.f32.vlgmr.msra.gmra.mrb[0].mxu0 %v240_v49 }
 0x14d   : > { %v558_v50 = vpop.f32.mrb[0].mxu0 }
 0x14e   : > { %v559_v52 = vpop.f32.mrb[1].mxu0 }
 0x14f   : > { %v560_v53 = vadd.f32 %v559_v52, %v558_v50 }
 0x151   : > { %v348_v54 = vadd.f32 %v560_v53, %v518_v51 }
 0x153   : > { %352 = vmax.xlane.f32.xlu0 %v348_v54  ;;  %351 = vst [vmem:[%s232_s28] sm:$0xff] %v348_v54 }
 0x1e0   : > { %v353_v55 = vpop.xlane.xlu0 %352 }
 0x1e1   : > { %v354_v56 = vsub.f32 %v348_v54, %v353_v55 }
 0x1e3   : > { %v355_v57 = vmul.f32 1.442695, %v354_v56 }
 0x1e5   : > { %657 = vpow2.f32 %v355_v57 }
 0x1ef   : > { %v658_v58 = vpop.eup %657 }
 0x1f0   : > { %357 = vadd.xlane.f32.xlu0 %v658_v58 }
 0x1f1   : > { %732 = shalt.err (!%p729_p7)
}
 0x1f2   : > { %s733_s12 = scalar_lea.hbm %s1018_s20, 128  ;;  %s737_s9 = scalar_lea.hbm %s1092_s3, 256 }
 0x1f3   : > { %p734_p9 = scmp.ne.s32.totalorder %s1018_s20, %s733_s12  ;;  %p738_p0 = scmp.lt.u32.totalorder %s1018_s20, %s1092_s3 }
 0x1f4   : > { %p739_p11 = scmp.lt.u32.totalorder %s737_s9, %s733_s12  ;;  %p741_p4 = scmp.lt.u32.totalorder %s733_s12, %s1018_s20 }
 0x1f5   : > { %p735_p2 = pnand %p734_p9, %p945_p12 }
 0x1f6   : > { %p740_p1 = por %p739_p11, %p738_p0 }
 0x1f7   : > { %p736_p5 = pneg %p735_p2 }
 0x1f8   : > { %p742_p6 = por %p741_p4, %p740_p1 }
 0x1fa   : > { %p743_p8 = pnand %p742_p6, %p736_p5 }
 0x1fc   : > { %746 = shalt.err (!%p743_p8)
}
 0x1fd   : > { %599 = dma.vmem_to_hbm [thread:$0]  (%p945_p12), %s382_s6, 128, %s1018_s20, %s363_s5  }
 0x1fe   : > { %s239_s14 = scalar_lea.vmem [#allocation8], %s516_s21  ;;  %s1045_s11 = scalar_lea.hbm %s1093_s4, %s521_s29 }
 0x1ff   : > { %s394_s7 = sshll.u32 %s239_s14, 4  ;;  %s368_s20 = scalar_lea.sflag [#allocation9], %s990_s25  ;;  %s1047_s7 = int_to_ptr.vmem [resolvable:$true] %s394_s7 }
 0x200   : > { %s747_s6 = scalar_lea.vmem %s1047_s7, 128  ;;  %s828_s21 = smov [#allocation8]  }
 0x201   : > { %p748_p10 = scmp.ne.s32.totalorder %s1047_s7, %s747_s6  ;;  %s751_s5 = sshll.u32 %s828_s21, 4  ;;  %s752_s5 = int_to_ptr.vmem [resolvable:$false] %s751_s5 }
 0x202   : > { %s753_s19 = scalar_lea.vmem %s752_s5, 256  ;;  %p754_p7 = scmp.lt.s32.totalorder %s1047_s7, %s752_s5 }
 0x203   : > { %p749_p13 = pnand %p748_p10, %p945_p12  ;;  %p755_p9 = scmp.lt.s32.totalorder %s753_s19, %s747_s6 }
 0x205   : > { %p750_p3 = pneg %p749_p13  ;;  %p756_p2 = por %p755_p9, %p754_p7 }
 0x207   : > { %p757_p5 = pnand %p756_p2, %p750_p3 }
 0x27d   : > { %v358_v59 = vpop.xlane.xlu0 %357 }
 0x27e   : > { %659 = vrcp.f32 %v358_v59 }
 0x288   : > { %v660_v60 = vpop.eup %659 }
 0x289   : > { %v360_v61 = vmul.f32 %v660_v60, %v658_v58 }
 0x28b   : > { %361 = vst [vmem:[%s239_s14] sm:$0xff] %v360_v61 }
 0x28c   : > { %760 = shalt.err (!%p757_p5)
}
 0x28d   : > { %s761_s25 = scalar_lea.hbm %s1045_s11, 128  ;;  %s765_s13 = scalar_lea.hbm %s1093_s4, 256 }
 0x28e   : > { %p762_p0 = scmp.ne.s32.totalorder %s1045_s11, %s761_s25  ;;  %p766_p4 = scmp.lt.u32.totalorder %s1045_s11, %s1093_s4 }
 0x28f   : > { %p767_p6 = scmp.lt.u32.totalorder %s765_s13, %s761_s25  ;;  %p769_p10 = scmp.lt.u32.totalorder %s761_s25, %s1045_s11 }
 0x290   : > { %p763_p11 = pnand %p762_p0, %p945_p12 }
 0x291   : > { %p768_p8 = por %p767_p6, %p766_p4 }
 0x292   : > { %p764_p1 = pneg %p763_p11 }
 0x293   : > { %p770_p13 = por %p769_p10, %p768_p8 }
 0x295   : > { %p771_p3 = pnand %p770_p13, %p764_p1 }
 0x297   : > { %774 = shalt.err (!%p771_p3)
}
 0x298   : > { %600 = dma.vmem_to_hbm [thread:$0]  (%p945_p12), %s1047_s7, 128, %s1045_s11, %s368_s20  }
 0x299 PF: > { %s406_s28 = sand.u32 1, %s809_s15   ;;  %p1108_p7 = scmp.ne.s32.totalorder %s1098_s22, 0 }
 0x29a   : > { %p1109_p9 = scmp.ge.s32.totalorder %s821_s18, 2  ;;  %s407_s10 = scalar_lea.sflag [#allocation4], %s406_s28 }
 0x29c   : > { %p612_p2 = pnand %p1109_p9, %p1108_p7 }
 0x29e   : > { %800 = dma.done.wait (!%p612_p2), %s407_s10, 128  }
 0x29f   : > { %802 = vsyncadd (!%p612_p2), %s407_s10, 4294967168  ;;  %s416_s14 = scalar_lea.sflag [#allocation9], %s406_s28 }
 0x2a0   : > { %804 = dma.done.wait (!%p612_p2), %s416_s14, 128  }
 0x2a1   : > { %806 = vsyncadd (!%p612_p2), %s416_s14, 4294967168  ;;  %p22_p12 = scmp.ge.s32.totalorder %s910_s27, 4   ;;  %s1110_s15 = smov %s813_s16 }
 0x2a2   : > { %s1111_s16 = smov %s817_s17  ;;  %s1112_s17 = smov %s941_s24 }
 0x2a3   : > { %s1113_s18 = smov %s910_s27  ;;  %24 = sbr.rel (!%p22_p12) target bundleno = 8 (0x8), region = 98 }
 0x2aa   :  { %421 = vsyncpa [#allocation3], 1 }
 0x2ab   :  { %423 = vsyncpa [#allocation3 + $0x1], 1 }
 0x2ac   :  { %424 = vsyncpa [#allocation6], 1 }
 0x2ad   :  { %425 = vsyncpa [#allocation4], 1 }
 0x2ae   :  { %427 = vsyncpa [#allocation4 + $0x1], 1 }
 0x2af   :  { %428 = vsyncpa [#allocation9], 1 }
 0x2b0   :  { %430 = vsyncpa [#allocation9 + $0x1], 1 }

</bundles_post_ra>
